<compile_context>
chip_gen: v6e
topology: v6e:2x2x1
jax: 0.10.0
libtpu: 0.0.40
codegen_flags: <defaults>
</compile_context>

<pallas_src>
import jax
import jax.numpy as jnp
from jax.experimental import pallas as pl
from jax.experimental.pallas import tpu as pltpu


def relu_kernel(x_ref, o_ref):
    # Pure elementwise ReLU on the whole VMEM block (VPU work), dtype-safe zero.
    x = x_ref[...]
    o_ref[...] = jnp.maximum(x, jnp.zeros((), x.dtype))


_LANE = 128
_SUBLANE = 8
# Inputs at/below this size run as one full-array block (no grid, no per-step
# overhead).  Kept small so multi-MiB inputs take the gridded "parallel" path,
# which can shard across both TensorCores on v7x.
_SINGLE_BLOCK_BYTES = 1 << 20
# Per-block byte cap for the gridded fallback.  8 MiB blocks => 2 arrays x
# 2 pipeline buffers x 8 MiB = 32 MiB of VMEM, which fits every generation
# once vmem_limit_bytes is raised explicitly (v7x physical VMEM is 64 MiB).
_TILED_BLOCK_BYTES = 8 << 20
_VMEM_LIMIT_BYTES = 48 << 20


def _relu_single_block(x2d):
    """Whole array as one VMEM block; no grid, dense vld/vst."""
    return pl.pallas_call(
        relu_kernel,
        out_shape=jax.ShapeDtypeStruct(x2d.shape, x2d.dtype),
        in_specs=[pl.BlockSpec(memory_space=pltpu.MemorySpace.VMEM)],
        out_specs=pl.BlockSpec(memory_space=pltpu.MemorySpace.VMEM),
        input_output_aliases={0: 0},
    )(x2d)


def relu_pallas(x: jax.Array) -> jax.Array:
    """ReLU(x) as a Pallas TPU kernel; semantics match nn.ReLU(inplace=True)."""
    total_bytes = x.size * x.dtype.itemsize

    # Fast path (taken by this module's [1, 4096] input): operate directly on
    # the original shape -- no reshape, so no HBM relayout copies and the
    # input/output alias is against the caller's buffer.
    if total_bytes <= _SINGLE_BLOCK_BYTES:
        return _relu_single_block(x)

    # Large-input fallback: tile the original 2-D shape along the leading
    # (sublane) axis with dense, (8, 128)-aligned blocks.  Keeping the full
    # last dim as the lane axis preserves the HBM tiled layout (no relayout)
    # and keeps stores unmasked.
    if x.ndim == 2 and x.shape[-1] % _LANE == 0 and x.shape[0] >= _SUBLANE:
        R, C = x.shape
        target_rows = max(_SUBLANE,
                          _TILED_BLOCK_BYTES // (C * x.dtype.itemsize))
        block_rows = min(R, (target_rows // _SUBLANE) * _SUBLANE)
        block_rows = max(block_rows, _SUBLANE)
        grid = (pl.cdiv(R, block_rows),)
        return pl.pallas_call(
            relu_kernel,
            out_shape=jax.ShapeDtypeStruct((R, C), x.dtype),
            grid=grid,
            in_specs=[pl.BlockSpec((block_rows, C), lambda i: (i, 0))],
            out_specs=pl.BlockSpec((block_rows, C), lambda i: (i, 0)),
            input_output_aliases={0: 0},
            compiler_params=pltpu.CompilerParams(
                dimension_semantics=("parallel",),
                vmem_limit_bytes=_VMEM_LIMIT_BYTES,
            ),
        )(x)

    # Shapes that can't be tiled cleanly along their own axes (never hit by
    # this module): flatten logically and run as a single block.
    # TODO(synk): tile huge non-2-D / non-128-aligned inputs instead of a
    # single block; unreachable for this module's [1, 4096] input.
    n = x.size
    x2d = x.reshape(n // _LANE, _LANE) if n % _LANE == 0 else x.reshape(1, n)
    return _relu_single_block(x2d).reshape(x.shape)


if __name__ == "__main__":
    key = jax.random.PRNGKey(0)
    # Module forward expects x27 of shape [1, 4096].
    x27 = jax.random.normal(key, (1, 4096), dtype=jnp.float32)

    out = relu_pallas(x27)
    jax.block_until_ready(out)

    # Correctness check against plain JAX reference.
    ref = jnp.maximum(x27, 0.0)
    assert out.shape == (1, 4096)
    assert out.dtype == jnp.float32
    assert jnp.allclose(out, ref), "Pallas ReLU mismatch vs reference"

    print("KERNEL_OK")
</pallas_src>

<mosaic_0001>
module attributes {stable_mosaic.version = 11 : i64} {
  func.func @relu_kernel(%arg0: memref<1x4096xf32, #tpu.memory_space<vmem>>, %arg1: memref<1x4096xf32, #tpu.memory_space<vmem>>) attributes {dimension_semantics = [], scalar_prefetch = 0 : i64, scratch_operands = 0 : i64, tpu.core_type = #tpu.core_type<tc>} {
    %c0 = arith.constant 0 : index
    %c0_0 = arith.constant 0 : index
    %0 = vector.load %arg0[%c0, %c0_0] : memref<1x4096xf32, #tpu.memory_space<vmem>>, vector<1x4096xf32>
    %cst = arith.constant 0.000000e+00 : f32
    %1 = vector.broadcast %cst : f32 to vector<1x4096xf32>
    %2 = arith.maximumf %0, %1 : vector<1x4096xf32>
    %c0_1 = arith.constant 0 : index
    %c0_2 = arith.constant 0 : index
    %3 = vector.load %arg1[%c0_1, %c0_2] : memref<1x4096xf32, #tpu.memory_space<vmem>>, vector<1x4096xf32>
    tpu.vector_store %arg1[%c0_1, %c0_2], %2 {strides = array<i32>} : memref<1x4096xf32, #tpu.memory_space<vmem>>, vector<1x4096xf32>,
    return
  }
}

</mosaic_0001>

<bundles_post_ra>
// kernel: tpu_custom_call.1
= control target key start
LH: loop header
LB: loop body
LE: loop exit
PB: predicated region body
PF: predicated region fallthrough
CT: control target
= control target key end

     0   :  { %6 = vsyncpa [#allocation3], 0  ;;  %s112_s0 = inlined_call_operand.hbm [shape: f32[1,4096], index: 0, kind: input, shape index: {}, may-alias: {0,1}]   ;;  %s113_s1 = inlined_call_operand.hbm [shape: f32[1,4096], index: 1, kind: output, shape index: {}, may-alias: {0,1}]  }
   0x1   :  { %7 = vsyncpa [#allocation4], 0  ;;  %s94_s6 = smov [#allocation2]  }
   0x2   :  { %s14_s7 = sshll.u32 %s94_s6, 4  ;;  %s15_s7 = int_to_ptr.vmem [resolvable:$true] %s14_s7 }
   0x3   :  { %s58_s8 = scalar_lea.vmem %s15_s7, 512  ;;  %p63_p1 = scmp.lt.s32.totalorder %s15_s7, %s15_s7 }
   0x4   :  { %p59_p0 = scmp.ne.s32.totalorder %s15_s7, %s58_s8  ;;  %p64_p2 = scmp.lt.s32.totalorder %s58_s8, %s58_s8 }
   0x6   :  { %p65_p3 = por %p64_p2, %p63_p1 }
   0x8   :  { %p66_p4 = pnand %p65_p3, %p59_p0 }
   0xa   :  { %69 = shalt.err (!%p66_p4)
}
   0xb   :  { %17 = dma.hbm_to_vmem [thread:$0]  %s112_s0, 512, %s15_s7, [#allocation3]  }
   0xc   :  { %90 = dma.done.wait [#allocation3], 512  }
   0xd   :  { %91 = vsyncadd [#allocation3], 4294966784  ;;  %s95_s11 = smov [#allocation5]   ;;  %v21_v0 = vld [vmem:[#allocation2] sm:$0xff]  ;;  %v22_v1 = vld [vmem:[#allocation2 + $0x8] sm:$0xff] }
   0xe   :  { %s39_s12 = sshll.u32 %s95_s11, 4  ;;  %v23_v2 = vld [vmem:[#allocation2 + $0x10] sm:$0xff]  ;;  %v25_v3 = vmax.f32 %v21_v0, 0.0  ;;  %v26_v4 = vmax.f32 %v22_v1, 0.0  ;;  %v24_v6 = vld [vmem:[#allocation2 + $0x18] sm:$0xff]  ;;  %s40_s12 = int_to_ptr.vmem [resolvable:$true] %s39_s12 }
   0xf   :  { %v27_v5 = vmax.f32 %v23_v2, 0.0  ;;  %v28_v7 = vmax.f32 %v24_v6, 0.0  ;;  %s70_s13 = scalar_lea.vmem %s40_s12, 512  ;;  %p75_p6 = scmp.lt.s32.totalorder %s40_s12, %s40_s12 }
  0x10   :  { %29 = vst [vmem:[#allocation5] sm:$0xff] %v25_v3  ;;  %30 = vst [vmem:[#allocation5 + $0x8] sm:$0xff] %v26_v4  ;;  %p71_p5 = scmp.ne.s32.totalorder %s40_s12, %s70_s13  ;;  %p76_p7 = scmp.lt.s32.totalorder %s70_s13, %s70_s13 }
  0x11   :  { %31 = vst [vmem:[#allocation5 + $0x10] sm:$0xff] %v27_v5  ;;  %32 = vst [vmem:[#allocation5 + $0x18] sm:$0xff] %v28_v7 }
  0x12   :  { %p77_p8 = por %p76_p7, %p75_p6 }
  0x14   :  { %p78_p9 = pnand %p77_p8, %p71_p5 }
  0x16   :  { %81 = shalt.err (!%p78_p9)
}
  0x17   :  { %42 = dma.vmem_to_hbm [thread:$0]  %s40_s12, 512, %s113_s1, [#allocation4]  }
  0x18   :  { %92 = dma.done.wait [#allocation4], 512  }
  0x19   :  { %93 = vsyncadd [#allocation4], 4294966784 }
  0x1a   :  { %46 = vsyncpa [#allocation3], 1 }
  0x1b   :  { %47 = vsyncpa [#allocation4], 1 }

</bundles_post_ra>
